<compile_context>
chip_gen: v6e
topology: v6e:2x2x1
jax: 0.10.0
libtpu: 0.0.40
codegen_flags: <defaults>
</compile_context>

<pallas_src>
import math
import functools

import jax
import jax.numpy as jnp
from jax import lax
from jax.experimental import pallas as pl
from jax.experimental.pallas import tpu as pltpu


# ---------------------------------------------------------------------------
# Tiled matmul (used for the QKV projection and the output projection).
# bf16 operands, f32 accumulation, output written once on the last K step.
# ---------------------------------------------------------------------------
def _matmul_kernel(x_ref, w_ref, o_ref, acc_ref):
    @pl.when(pl.program_id(2) == 0)
    def _init():
        acc_ref[...] = jnp.zeros_like(acc_ref)

    acc_ref[...] += jnp.dot(x_ref[...], w_ref[...],
                            preferred_element_type=jnp.float32)

    @pl.when(pl.program_id(2) == pl.num_programs(2) - 1)
    def _store():
        o_ref[...] = acc_ref[...].astype(o_ref.dtype)


def _pick_tile(dim, target):
    # Use the target tile if it divides the dim, otherwise fall back to the
    # full dim (satisfies the (8,128) BlockSpec rule at small/toy shapes).
    return target if dim % target == 0 else dim


def _matmul(a, b, *, out_dtype, tm=256, tn=256, tk=512):
    M, K = a.shape
    K2, N = b.shape
    assert K == K2
    tm = _pick_tile(M, tm)
    tn = _pick_tile(N, tn)
    tk = _pick_tile(K, tk)
    grid = (M // tm, N // tn, K // tk)
    return pl.pallas_call(
        _matmul_kernel,
        out_shape=jax.ShapeDtypeStruct((M, N), out_dtype),
        grid_spec=pltpu.PrefetchScalarGridSpec(
            num_scalar_prefetch=0,
            grid=grid,
            in_specs=[
                pl.BlockSpec((tm, tk), lambda i, j, kk: (i, kk)),
                pl.BlockSpec((tk, tn), lambda i, j, kk: (kk, j)),
            ],
            out_specs=pl.BlockSpec((tm, tn), lambda i, j, kk: (i, j)),
            scratch_shapes=[pltpu.VMEM((tm, tn), jnp.float32)],
        ),
        compiler_params=pltpu.CompilerParams(
            dimension_semantics=("parallel", "parallel", "arbitrary")),
    )(a, b)


# ---------------------------------------------------------------------------
# Flash-style causal attention: grid (B, H, q_tiles, kv_tiles).
# Softmax math stays f32; only MXU operands (q, k, p, v) are bf16.
# ---------------------------------------------------------------------------
def _flash_attn_kernel(q_ref, k_ref, v_ref, o_ref, m_sc, l_sc, acc_sc,
                       *, tq, tk, scale):
    qi = pl.program_id(2)
    kv = pl.program_id(3)

    @pl.when(kv == 0)
    def _init():
        m_sc[...] = jnp.full_like(m_sc, -jnp.inf)
        l_sc[...] = jnp.zeros_like(l_sc)
        acc_sc[...] = jnp.zeros_like(acc_sc)

    # Skip kv tiles that are entirely above the causal diagonal.
    @pl.when(kv * tk <= qi * tq + (tq - 1))
    def _compute():
        qh = q_ref[0, 0] * scale            # (tq, hs) bf16, scale folded into q
        kh = k_ref[0, 0]                    # (tk, hs) bf16
        vh = v_ref[0, 0]                    # (tk, hs) bf16

        # q @ k^T without materializing a transpose: contract last dims.
        s = lax.dot_general(qh, kh, (((1,), (1,)), ((), ())),
                            preferred_element_type=jnp.float32)   # (tq, tk) f32

        q_pos = qi * tq + lax.broadcasted_iota(jnp.int32, (tq, tk), 0)
        k_pos = kv * tk + lax.broadcasted_iota(jnp.int32, (tq, tk), 1)
        s = jnp.where(k_pos <= q_pos, s, jnp.float32(-1e30))

        m_prev = m_sc[...]
        m_new = jnp.maximum(m_prev, jnp.max(s, axis=-1, keepdims=True))
        alpha = jnp.exp(m_prev - m_new)                    # (tq, 1) f32
        p = jnp.exp(s - m_new)                             # (tq, tk) f32
        l_sc[...] = alpha * l_sc[...] + jnp.sum(p, axis=-1, keepdims=True)
        acc_sc[...] = alpha * acc_sc[...] + jnp.dot(
            p.astype(vh.dtype), vh, preferred_element_type=jnp.float32)
        m_sc[...] = m_new

    @pl.when(kv == pl.num_programs(3) - 1)
    def _finalize():
        inv_l = pl.reciprocal(l_sc[...], approx=True)      # EUP, ~free
        o_ref[0, 0] = (acc_sc[...] * inv_l).astype(o_ref.dtype)


def _flash_attention(q, k, v):
    """q, k, v: (B, H, T, hs) bf16 -> (B, H, T, hs) bf16."""
    B, H, T, hs = q.shape
    scale = 1.0 / math.sqrt(hs)
    tq = 128 if T % 128 == 0 else T
    tk = tq
    kernel = functools.partial(_flash_attn_kernel, tq=tq, tk=tk, scale=scale)
    return pl.pallas_call(
        kernel,
        out_shape=jax.ShapeDtypeStruct((B, H, T, hs), q.dtype),
        grid_spec=pltpu.PrefetchScalarGridSpec(
            num_scalar_prefetch=0,
            grid=(B, H, T // tq, T // tk),
            in_specs=[
                pl.BlockSpec((1, 1, tq, hs), lambda b, h, qi, kv: (b, h, qi, 0)),
                pl.BlockSpec((1, 1, tk, hs), lambda b, h, qi, kv: (b, h, kv, 0)),
                pl.BlockSpec((1, 1, tk, hs), lambda b, h, qi, kv: (b, h, kv, 0)),
            ],
            out_specs=pl.BlockSpec((1, 1, tq, hs),
                                   lambda b, h, qi, kv: (b, h, qi, 0)),
            scratch_shapes=[
                pltpu.VMEM((tq, 1), jnp.float32),    # running max
                pltpu.VMEM((tq, 1), jnp.float32),    # running denom
                pltpu.VMEM((tq, hs), jnp.float32),   # output accumulator
            ],
        ),
        compiler_params=pltpu.CompilerParams(
            dimension_semantics=("parallel", "parallel", "parallel",
                                 "arbitrary")),
    )(q, k, v)


# ---------------------------------------------------------------------------
# Full module forward.
# ---------------------------------------------------------------------------
def causal_self_attention(x, w_attn, w_proj, *, n_head):
    """x: (B, T, C) f32. w_attn: (3C, C), w_proj: (C, C) (PyTorch Linear layout)."""
    B, T, C = x.shape
    assert C % n_head == 0
    hs = C // n_head

    # bf16 MXU operands (f32 accumulation inside the kernels).
    x_bf = x.reshape(B * T, C).astype(jnp.bfloat16)
    w_attn_bf = w_attn.T.astype(jnp.bfloat16)          # (C, 3C)
    w_proj_bf = w_proj.T.astype(jnp.bfloat16)          # (C, C)

    # 1) QKV projection: lane-dense (B*T, C) @ (C, 3C).
    qkv = _matmul(x_bf, w_attn_bf, out_dtype=jnp.bfloat16)   # (B*T, 3C)

    # Head split (layout plumbing in the wrapper).
    qkv = qkv.reshape(B, T, 3, n_head, hs)
    q = qkv[:, :, 0].transpose(0, 2, 1, 3)             # (B, H, T, hs)
    k = qkv[:, :, 1].transpose(0, 2, 1, 3)
    v = qkv[:, :, 2].transpose(0, 2, 1, 3)

    # 2) Causal flash attention.
    y = _flash_attention(q, k, v)                       # (B, H, T, hs) bf16

    # Head merge, then 3) output projection: lane-dense (B*T, C) @ (C, C).
    y = y.transpose(0, 2, 1, 3).reshape(B * T, C)
    out = _matmul(y, w_proj_bf, out_dtype=x.dtype)      # (B*T, C) f32

    # Dropout (attn_dropout / resid_dropout) has p=0.0 in the config -> no-op.
    return out.reshape(B, T, C)


# ---------------------------------------------------------------------------
# Pure-JAX reference (f32).
# ---------------------------------------------------------------------------
def _reference(x, w_attn, w_proj, n_head):
    B, T, C = x.shape
    hs = C // n_head
    qkv = jnp.einsum("btc,oc->bto", x, w_attn)          # (B, T, 3C)
    q, k, v = jnp.split(qkv, 3, axis=-1)

    def heads(a):
        return a.reshape(B, T, n_head, hs).transpose(0, 2, 1, 3)

    q, k, v = heads(q), heads(k), heads(v)
    s = jnp.einsum("bhtd,bhsd->bhts", q, k) / math.sqrt(hs)
    mask = jnp.tril(jnp.ones((T, T), dtype=bool))
    s = jnp.where(mask[None, None], s, -jnp.inf)
    p = jax.nn.softmax(s, axis=-1)
    y = jnp.einsum("bhts,bhsd->bhtd", p, v)
    y = y.transpose(0, 2, 1, 3).reshape(B, T, C)
    return jnp.einsum("btc,oc->bto", y, w_proj)


if __name__ == "__main__":
    # Small config consistent with the module: emb_size=32, head_nb=4, block_size=8
    B, T, C, H = 2, 8, 32, 4

    key = jax.random.PRNGKey(0)
    kx, ka, kp = jax.random.split(key, 3)

    x = jax.random.normal(kx, (B, T, C), dtype=jnp.float32)
    # PyTorch nn.Linear default init: U(-1/sqrt(fan_in), 1/sqrt(fan_in))
    bound = 1.0 / math.sqrt(C)
    w_attn = jax.random.uniform(ka, (3 * C, C), jnp.float32, -bound, bound)
    w_proj = jax.random.uniform(kp, (C, C), jnp.float32, -bound, bound)

    y = causal_self_attention(x, w_attn, w_proj, n_head=H)
    y = jax.block_until_ready(y)

    y_ref = _reference(x, w_attn, w_proj, H)
    # bf16 MXU operands with f32 accumulation -> ~1e-2 scale tolerance.
    assert jnp.allclose(y, y_ref, atol=2e-2, rtol=2e-2), "mismatch vs reference"

    print("KERNEL_OK")
</pallas_src>

<mosaic_0001>
module attributes {stable_mosaic.version = 11 : i64} {
  func.func @_matmul_kernel(%arg0: i32, %arg1: i32, %arg2: i32, %arg3: memref<16x32xbf16, #tpu.memory_space<vmem>>, %arg4: memref<32x96xbf16, #tpu.memory_space<vmem>>, %arg5: memref<16x96xbf16, #tpu.memory_space<vmem>>, %arg6: memref<16x96xf32, #tpu.memory_space<vmem>>) attributes {dimension_semantics = [#tpu.dimension_semantics<parallel>, #tpu.dimension_semantics<parallel>, #tpu.dimension_semantics<arbitrary>], iteration_bounds = array<i64: 1, 1, 1>, scalar_prefetch = 0 : i64, scratch_operands = 1 : i64, tpu.core_type = #tpu.core_type<tc>, window_params = [{transform_indices = @transform_0, window_bounds = array<i64: 16, 32>}, {transform_indices = @transform_1, window_bounds = array<i64: 32, 96>}, {transform_indices = @transform_2, window_bounds = array<i64: 16, 96>}]} {
    %c0_i32 = arith.constant 0 : i32
    %0 = arith.cmpi eq, %arg2, %c0_i32 : i32
    %1 = arith.extui %0 : i1 to i32
    %c0_i32_0 = arith.constant 0 : i32
    %2 = arith.cmpi ne, %1, %c0_i32_0 : i32
    scf.if %2 {
      %cst_10 = arith.constant 0.000000e+00 : f32
      %12 = vector.broadcast %cst_10 : f32 to vector<16x96xf32>
      %c0_11 = arith.constant 0 : index
      %c0_12 = arith.constant 0 : index
      %13 = vector.load %arg6[%c0_11, %c0_12] : memref<16x96xf32, #tpu.memory_space<vmem>>, vector<16x96xf32>
      tpu.vector_store %arg6[%c0_11, %c0_12], %12 {strides = array<i32>} : memref<16x96xf32, #tpu.memory_space<vmem>>, vector<16x96xf32>,
    } else {
    }
    %c0 = arith.constant 0 : index
    %c0_1 = arith.constant 0 : index
    %3 = vector.load %arg6[%c0, %c0_1] : memref<16x96xf32, #tpu.memory_space<vmem>>, vector<16x96xf32>
    %c0_2 = arith.constant 0 : index
    %c0_3 = arith.constant 0 : index
    %4 = vector.load %arg3[%c0_2, %c0_3] : memref<16x32xbf16, #tpu.memory_space<vmem>>, vector<16x32xbf16>
    %c0_4 = arith.constant 0 : index
    %c0_5 = arith.constant 0 : index
    %5 = vector.load %arg4[%c0_4, %c0_5] : memref<32x96xbf16, #tpu.memory_space<vmem>>, vector<32x96xbf16>
    %cst = arith.constant dense<0.000000e+00> : vector<16x96xf32>
    %6 = tpu.matmul %4, %5, %cst {dimension_numbers = #tpu.dot_dimension_numbers<[1], [0], [0], [1], [0, 0, 1, 1], [], []>} : vector<16x32xbf16>, vector<32x96xbf16>, vector<16x96xf32> -> vector<16x96xf32>
    %7 = arith.addf %3, %6 : vector<16x96xf32>
    %c0_6 = arith.constant 0 : index
    %c0_7 = arith.constant 0 : index
    %8 = vector.load %arg6[%c0_6, %c0_7] : memref<16x96xf32, #tpu.memory_space<vmem>>, vector<16x96xf32>
    tpu.vector_store %arg6[%c0_6, %c0_7], %7 {strides = array<i32>} : memref<16x96xf32, #tpu.memory_space<vmem>>, vector<16x96xf32>,
    %c0_i32_8 = arith.constant 0 : i32
    %9 = arith.cmpi eq, %arg2, %c0_i32_8 : i32
    %10 = arith.extui %9 : i1 to i32
    %c0_i32_9 = arith.constant 0 : i32
    %11 = arith.cmpi ne, %10, %c0_i32_9 : i32
    scf.if %11 {
      %c0_10 = arith.constant 0 : index
      %c0_11 = arith.constant 0 : index
      %12 = vector.load %arg6[%c0_10, %c0_11] : memref<16x96xf32, #tpu.memory_space<vmem>>, vector<16x96xf32>
      %13 = arith.truncf %12 : vector<16x96xf32> to vector<16x96xbf16>
      %c0_12 = arith.constant 0 : index
      %c0_13 = arith.constant 0 : index
      %14 = vector.load %arg5[%c0_12, %c0_13] : memref<16x96xbf16, #tpu.memory_space<vmem>>, vector<16x96xbf16>
      tpu.vector_store %arg5[%c0_12, %c0_13], %13 {strides = array<i32>} : memref<16x96xbf16, #tpu.memory_space<vmem>>, vector<16x96xbf16>,
    } else {
    }
    return
  }
  func.func @transform_0(%arg0: i32, %arg1: i32, %arg2: i32) -> (i32, i32) {
    %c0_i32 = arith.constant 0 : i32
    return %arg0, %arg2 : i32, i32
  }
  func.func @transform_1(%arg0: i32, %arg1: i32, %arg2: i32) -> (i32, i32) {
    %c0_i32 = arith.constant 0 : i32
    return %arg2, %arg1 : i32, i32
  }
  func.func @transform_2(%arg0: i32, %arg1: i32, %arg2: i32) -> (i32, i32) {
    %c0_i32 = arith.constant 0 : i32
    return %arg0, %arg1 : i32, i32
  }
}

</mosaic_0001>

<bundles_post_ra>
// kernel: tpu_custom_call.1
= control target key start
LH: loop header
LB: loop body
LE: loop exit
PB: predicated region body
PF: predicated region fallthrough
CT: control target
= control target key end

     0   :  { %7 = vsyncpa [#allocation4], 0  ;;  %s296_s0 = inlined_call_operand.hbm [shape: bf16[16,32], index: 0, kind: input, shape index: {}]   ;;  %s297_s1 = inlined_call_operand.hbm [shape: bf16[32,96], index: 1, kind: input, shape index: {}]   ;;  %s298_s2 = inlined_call_operand.hbm [shape: bf16[16,96], index: 2, kind: output, shape index: {}]  }
   0x1   :  { %8 = vsyncpa [#allocation7], 0 }
   0x2   :  { %9 = vsyncpa [#allocation5], 0  ;;  %s252_s9 = smov [#allocation3]  }
   0x3   :  { %s15_s10 = sshll.u32 %s252_s9, 4  ;;  %s16_s10 = int_to_ptr.vmem [resolvable:$true] %s15_s10 }
   0x4   :  { %s194_s11 = scalar_lea.vmem %s16_s10, 128  ;;  %p199_p1 = scmp.lt.s32.totalorder %s16_s10, %s16_s10 }
   0x5   :  { %p195_p0 = scmp.ne.s32.totalorder %s16_s10, %s194_s11  ;;  %p200_p2 = scmp.lt.s32.totalorder %s194_s11, %s194_s11 }
   0x7   :  { %p201_p3 = por %p200_p2, %p199_p1 }
   0x9   :  { %p202_p4 = pnand %p201_p3, %p195_p0 }
   0xb   :  { %205 = shalt.err (!%p202_p4)
}
   0xc   :  { %s253_s12 = smov 64   ;;  %s254_s13 = smov 4  }
   0xd   :  { %21 = dma.hbm_to_vmem [thread:$0]  %s296_s0, 128, %s16_s10, [#allocation4], %s253_s12, %s253_s12, %s254_s13  }
   0xe   :  { %s255_s16 = smov [#allocation6]  }
   0xf   :  { %s27_s17 = sshll.u32 %s255_s16, 4  ;;  %s28_s17 = int_to_ptr.vmem [resolvable:$true] %s27_s17 }
  0x10   :  { %s214_s18 = scalar_lea.vmem %s28_s17, 256  ;;  %p219_p6 = scmp.lt.s32.totalorder %s28_s17, %s28_s17 }
  0x11   :  { %p215_p5 = scmp.ne.s32.totalorder %s28_s17, %s214_s18  ;;  %p220_p7 = scmp.lt.s32.totalorder %s214_s18, %s214_s18 }
  0x13   :  { %p221_p8 = por %p220_p7, %p219_p6 }
  0x15   :  { %p222_p9 = pnand %p221_p8, %p215_p5 }
  0x17   :  { %225 = shalt.err (!%p222_p9)
}
  0x18   :  { %33 = dma.hbm_to_vmem [thread:$0]  %s297_s1, 256, %s28_s17, [#allocation7], %s253_s12, %s253_s12, %s254_s13  }
  0x19   :  { %246 = dma.done.wait [#allocation4], 128  }
  0x1a   :  { %247 = vsyncadd [#allocation4], 4294967168 }
  0x1b   :  { %248 = dma.done.wait [#allocation7], 256  }
  0x1c   :  { %249 = vsyncadd [#allocation7], 4294967040  ;;  %vm45_vm0 = vcmask 785408   ;;  %v256_v0 = vmov 0.0   ;;  %vm257_vm1 = vmmov 0   ;;  %v183_v1 = vld [vmem:[#allocation6 + $0x8] sm:$0xff]  }
  0x1d   :  { %46 = vst.msk [vmem:[#allocation2] sm:$0xff] %vm45_vm0, %v256_v0  ;;  %47 = vst.msk [vmem:[#allocation2 + $0x8] sm:$0xff] %vm45_vm0, %v256_v0  ;;  %168 = vmatprep.subr.bf16.mxu0 %v256_v0  ;;  %172 = vmatprep.mubr.msk.bf16.mxu0 %vm257_vm1, %v256_v0  ;;  %v184_v2 = vld [vmem:[#allocation6] sm:$0xff]   ;;  %v185_v3 = vld [vmem:[#allocation3] sm:$0xff]   ;;  %vm73_vm2 = vcmask 261120   ;;  %vm136_vm3 = vcmask 781312  }
  0x1e   :  { %169 = vmatpush3.bf16.msra.mxu0 %v183_v1  ;;  %s258_s0 = smov [#allocation8]  }
  0x1f   :  { %170 = vmatprep.subr.bf16.mxu0 %v256_v0  ;;  %s144_s1 = sshll.u32 %s258_s0, 4  ;;  %s145_s1 = int_to_ptr.vmem [resolvable:$true] %s144_s1 }
  0x20   :  { %s226_s21 = scalar_lea.vmem %s145_s1, 128  ;;  %p231_p11 = scmp.lt.s32.totalorder %s145_s1, %s145_s1 }
  0x21   :  { %p227_p10 = scmp.ne.s32.totalorder %s145_s1, %s226_s21  ;;  %p232_p12 = scmp.lt.s32.totalorder %s226_s21, %s226_s21 }
  0x22   :  { %171 = vmatpush3.bf16.msra.mxu0 %v184_v2 }
  0x23   :  { %p233_p13 = por %p232_p12, %p231_p11 }
  0x24   :  { %v48_v4 = vld [vmem:[#allocation2] sm:$0xff]  ;;  %v49_v8 = vld [vmem:[#allocation2 + $0x8] sm:$0xff] }
  0x25   :  { %173 = vmatmul.mubr.msk.bf16.vlgmr.msra.gmra.mxu0 %vm73_vm2, %v185_v3  ;;  %p234_p0 = pnand %p233_p13, %p227_p10 }
  0xe5   :  { %v111_v5 = vpop.f32.mrf.mxu0 }
  0xe6   :  { %v118_v6 = vadd.f32 %v111_v5, %v48_v4 }
  0xe7   :  { %v174_v7 = vpop.f32.mrf.mxu0 }
  0xe8   :  { %121 = vst.msk [vmem:[#allocation2] sm:$0xff] %vm45_vm0, %v118_v6 }
  0xe9   :  { %v114_v9 = vpop.f32.mrf.mxu0 }
  0xea   :  { %v119_v10 = vadd.f32 %v114_v9, %v49_v8 }
  0xeb   :  { %v175_v11 = vpop.f32.mrf.mxu0 }
  0xec   :  { %122 = vst.msk [vmem:[#allocation2 + $0x8] sm:$0xff] %vm45_vm0, %v119_v10 }
  0xef   :  { %v126_v12 = vld [vmem:[#allocation2] sm:$0xff] }
  0xf0   :  { %v163_v13 = vpack.c.bf16 %v126_v12, %v126_v12 }
  0xf2   :  { %137 = vst.msk [vmem:[#allocation8] sm:$0xf] %vm136_vm3, %v163_v13 }
  0xf3   :  { %v127_v14 = vld [vmem:[#allocation2 + $0x8] sm:$0xff] }
  0xf4   :  { %v164_v15 = vpack.c.bf16 %v127_v14, %v127_v14 }
  0xf6   :  { %138 = vst.msk [vmem:[#allocation8 + $0x4] sm:$0xf] %vm136_vm3, %v164_v15 }
  0xf7   :  { %237 = shalt.err (!%p234_p0)
}
  0xf8   :  { %150 = dma.vmem_to_hbm [thread:$0]  %s145_s1, 128, %s298_s2, [#allocation5], %s253_s12, %s253_s12, %s254_s13  }
  0xf9   :  { %250 = dma.done.wait [#allocation5], 128  }
  0xfa   :  { %251 = vsyncadd [#allocation5], 4294967168 }
  0xfb   :  { %154 = vsyncpa [#allocation4], 1 }
  0xfc   :  { %155 = vsyncpa [#allocation7], 1 }
  0xfd   :  { %156 = vsyncpa [#allocation5], 1 }

</bundles_post_ra>
